<compile_context>
chip_gen: v7x
topology: tpu7x:2x2x1
jax: 0.10.0
libtpu: 0.0.40
codegen_flags: <defaults>
</compile_context>

<pallas_src>
import jax
import jax.numpy as jnp
from jax.experimental import pallas as pl
from jax.experimental.pallas import tpu as pltpu

_TILE_TARGET_BYTES = 4 * 1024 * 1024   # ~4 MiB per streamed tile (mem-bound add)
_VMEM_LIMIT_BYTES = 32 * 1024 * 1024   # safe on v5e/v6e (128 MiB) and v7x (64 MiB)


def _add_pe_kernel(x_ref, pe_ref, o_ref):
    # x_ref/o_ref: (bt, rt, C); pe_ref: (rt, C).  Leading-dim broadcast is pure
    # vreg reuse (no XLU relayout); the add is a VPU stream, dtypes already match.
    o_ref[...] = x_ref[...] + pe_ref[...]


def _sublane_quantum(dtype) -> int:
    # 8 rows for 4-byte dtypes, 16 for 2-byte, 32 for 1-byte (packed sublanes).
    return max(8, 32 // jnp.dtype(dtype).itemsize)


def _stream_add(x3, pe2):
    """out[b, r, c] = x3[b, r, c] + pe2[r, c].

    x3: (B, R, C) with C % 128 == 0; pe2: (Rpe, C) with Rpe >= R (same dtype).
    """
    B, R, C = x3.shape
    itemsize = jnp.dtype(x3.dtype).itemsize
    sub = _sublane_quantum(x3.dtype)

    # Row budget per grid step for a ~4 MiB x-tile.
    rows_budget = max(sub, _TILE_TARGET_BYTES // (C * itemsize))
    if R <= rows_budget:
        rt = R                                   # full row extent per step
        bt = max(1, min(B, rows_budget // R))    # merge batch rows to fill the tile
    else:
        rt = max(sub, (rows_budget // sub) * sub)
        bt = 1
    num_r = pl.cdiv(R, rt)
    num_b = pl.cdiv(B, bt)

    # v7x megacore: expose >= 2 parallel grid slices when possible so both
    # TensorCores are fed (no-op cost on single-TC v5e/v6e).
    if num_r * num_b < 2:
        if bt > 1:
            bt = (bt + 1) // 2
            num_b = pl.cdiv(B, bt)
        elif R >= 2 * sub:
            rt = max(sub, ((R // 2) // sub) * sub)
            num_r = pl.cdiv(R, rt)

    return pl.pallas_call(
        _add_pe_kernel,
        out_shape=jax.ShapeDtypeStruct((B, R, C), x3.dtype),
        grid_spec=pltpu.PrefetchScalarGridSpec(
            num_scalar_prefetch=0,
            # Batch innermost: the pe block index is constant across bi, so the
            # pe tile is fetched once per row tile, not once per (row, batch).
            grid=(num_r, num_b),
            in_specs=[
                pl.BlockSpec((bt, rt, C), lambda ri, bi: (bi, ri, 0)),
                # pe rows selected straight from the table; partial last tiles
                # and rows in [R, num_r*rt) are handled by Pallas edge masking.
                pl.BlockSpec((rt, C), lambda ri, bi: (ri, 0)),
            ],
            out_specs=pl.BlockSpec((bt, rt, C), lambda ri, bi: (bi, ri, 0)),
        ),
        # Only a true in-place update when the caller donates x at the jit
        # boundary (donate_argnums=0); harmless (XLA defensive copy) otherwise.
        input_output_aliases={0: 0},
        compiler_params=pltpu.CompilerParams(
            dimension_semantics=("parallel", "parallel"),
            vmem_limit_bytes=_VMEM_LIMIT_BYTES,
        ),
    )(x3, pe2)


def _tiled_lane_dense(x, pe_table):
    """Main path: D is a multiple of 128."""
    B, S, D = x.shape
    if pe_table.dtype != x.dtype:
        # A cast copy is unavoidable; slice to S rows first so it stays small.
        pe = pe_table[:S, :].astype(x.dtype)
    else:
        # Pass the FULL table untouched: BlockSpec picks rows straight from
        # HBM, no wrapper-side slice/copy.  The last partial tile may read
        # table rows in [S, ceil(S/rt)*rt); those sums land in masked/discarded
        # output rows and every block index stays valid because S <= max_len.
        # Do not "fix" this by re-slicing pe (that reintroduces an HBM copy).
        pe = pe_table
    return _stream_add(x, pe)


def _flattened_small_d(x, pe_table):
    """Fallback: D not a multiple of 128 (e.g. d_model=32).

    Flatten (S, D) and reshape to sublane-dense (rows, 128) tiles so both
    loads and stores are full-lane, full-sublane vector ops.
    """
    B, S, D = x.shape
    SD = S * D
    lanes = 128
    rows = pl.cdiv(SD, lanes)
    SDp = rows * lanes
    pad = SDp - SD

    x2 = x.reshape(B, SD)
    pe1 = pe_table[:S, :].astype(x.dtype).reshape(SD)
    if pad:
        # TODO(synk): the pad adds one extra HBM pass over x; a masked ragged
        # tail tile would avoid it, but typical d_model sizes hit pad == 0.
        x2 = jnp.pad(x2, ((0, 0), (0, pad)))
        pe1 = jnp.pad(pe1, (0, pad))
    x3 = x2.reshape(B, rows, lanes)
    pe2 = pe1.reshape(rows, lanes)

    out = _stream_add(x3, pe2)
    out = out.reshape(B, SDp)
    if pad:
        out = out[:, :SD]
    return out.reshape(B, S, D)


def learnable_positional_encoding(x, pe_table):
    """x: (B, S, D), pe_table: (max_len, D) -> x + pe_table[:S] (broadcast over B).

    For a real in-place update, jit with donate_argnums=0 (and never read x
    after the call); without donation XLA inserts a defensive copy of x.
    """
    B, S, D = x.shape
    max_len = pe_table.shape[0]
    assert S <= max_len, "sequence length exceeds max_len of the embedding table"
    if D % 128 == 0:
        return _tiled_lane_dense(x, pe_table)
    return _flattened_small_d(x, pe_table)


if __name__ == "__main__":
    key = jax.random.PRNGKey(0)
    k1, k2, k3, k4 = jax.random.split(key, 4)

    # Donate x so input_output_aliases={0: 0} is a genuine in-place update.
    fwd = jax.jit(learnable_positional_encoding, donate_argnums=0)

    # Demo shape consistent with the module: batch=2, seq=8, d_model=32.
    B, S, D = 2, 8, 32
    MAX_LEN = 64  # stand-in for max_len=5000
    x = jax.random.normal(k1, (B, S, D), dtype=jnp.float32)
    pe_table = jax.random.normal(k2, (MAX_LEN, D), dtype=jnp.float32)

    # Reference is computed and materialized BEFORE the donating call.
    ref = jax.block_until_ready(x + pe_table[:S, :][None, :, :])
    out = jax.block_until_ready(fwd(x, pe_table))
    assert out.shape == (B, S, D)
    assert jnp.allclose(out, ref, atol=1e-6), "mismatch vs reference (flattened path)"

    # Also exercise the lane-dense tiled path (d_model multiple of 128).
    B2, S2, D2 = 2, 24, 128
    x2 = jax.random.normal(k3, (B2, S2, D2), dtype=jnp.float32)
    pe_table2 = jax.random.normal(k4, (MAX_LEN, D2), dtype=jnp.float32)
    ref2 = jax.block_until_ready(x2 + pe_table2[:S2, :][None, :, :])
    out2 = jax.block_until_ready(fwd(x2, pe_table2))
    assert jnp.allclose(out2, ref2, atol=1e-6), "mismatch vs reference (tiled path)"

    print("KERNEL_OK")
</pallas_src>

<mosaic_0001>
module attributes {stable_mosaic.version = 11 : i64} {
  func.func @_add_pe_kernel(%arg0: i32, %arg1: i32, %arg2: memref<1x2x128xf32, #tpu.memory_space<vmem>>, %arg3: memref<2x128xf32, #tpu.memory_space<vmem>>, %arg4: memref<1x2x128xf32, #tpu.memory_space<vmem>>) attributes {dimension_semantics = [#tpu.dimension_semantics<parallel>, #tpu.dimension_semantics<parallel>], iteration_bounds = array<i64: 1, 2>, scalar_prefetch = 0 : i64, scratch_operands = 0 : i64, tpu.core_type = #tpu.core_type<tc>, window_params = [{transform_indices = @transform_0, window_bounds = array<i64: 1, 2, 128>}, {transform_indices = @transform_1, window_bounds = array<i64: 2, 128>}, {transform_indices = @transform_2, window_bounds = array<i64: 1, 2, 128>}]} {
    %c0 = arith.constant 0 : index
    %c0_0 = arith.constant 0 : index
    %c0_1 = arith.constant 0 : index
    %0 = vector.load %arg2[%c0, %c0_0, %c0_1] : memref<1x2x128xf32, #tpu.memory_space<vmem>>, vector<1x2x128xf32>
    %c0_2 = arith.constant 0 : index
    %c0_3 = arith.constant 0 : index
    %1 = vector.load %arg3[%c0_2, %c0_3] : memref<2x128xf32, #tpu.memory_space<vmem>>, vector<2x128xf32>
    %2 = vector.shape_cast %1 : vector<2x128xf32> to vector<1x2x128xf32>
    %3 = arith.addf %0, %2 : vector<1x2x128xf32>
    %c0_4 = arith.constant 0 : index
    %c0_5 = arith.constant 0 : index
    %c0_6 = arith.constant 0 : index
    %4 = vector.load %arg4[%c0_4, %c0_5, %c0_6] : memref<1x2x128xf32, #tpu.memory_space<vmem>>, vector<1x2x128xf32>
    tpu.vector_store %arg4[%c0_4, %c0_5, %c0_6], %3 {strides = array<i32>} : memref<1x2x128xf32, #tpu.memory_space<vmem>>, vector<1x2x128xf32>,
    return
  }
  func.func @transform_0(%arg0: i32, %arg1: i32) -> (i32, i32, i32) {
    %c0_i32 = arith.constant 0 : i32
    %c0_i32_0 = arith.constant 0 : i32
    return %arg1, %arg0, %c0_i32 : i32, i32, i32
  }
  func.func @transform_1(%arg0: i32, %arg1: i32) -> (i32, i32) {
    %c0_i32 = arith.constant 0 : i32
    %c0_i32_0 = arith.constant 0 : i32
    return %arg0, %c0_i32 : i32, i32
  }
  func.func @transform_2(%arg0: i32, %arg1: i32) -> (i32, i32, i32) {
    %c0_i32 = arith.constant 0 : i32
    %c0_i32_0 = arith.constant 0 : i32
    return %arg1, %arg0, %c0_i32 : i32, i32, i32
  }
}

</mosaic_0001>

<bundles_post_ra>
// kernel: learnable_positional_encoding.1
= control target key start
LH: loop header
LB: loop body
LE: loop exit
PB: predicated region body
PF: predicated region fallthrough
CT: control target
= control target key end

     0   :  { %s354_s9 = smov 0   ;;  %s331_s10 = smov 0   ;;  %s368_s0 = inlined_call_operand.vmem [shape: f32[2,2,128], index: 0, kind: input, shape index: {}, may-alias: {0,2}]   ;;  %s369_s1 = inlined_call_operand.vmem [shape: f32[2,128], index: 1, kind: input, shape index: {}]   ;;  %s370_s2 = inlined_call_operand.vmem [shape: f32[2,2,128], index: 2, kind: output, shape index: {}, may-alias: {0,2}]  }
   0x1   :  { %s335_s11 = smov 0  }
   0x2 LB: > { %s21_s12 = sadd.s32 1, %s333_s10  ;;  %p286_p0 = scmp.ge.s32.totalorder %s337_s11, 1  ;;  %s337_s11 = sphi %s335_s11, %s12_s11   ;;  %s333_s10 = sphi %s331_s10, %s332_s10   ;;  %s329_s9 = sphi %s354_s9, %s371_s9  }
   0x3   : > { %p22_p1 = scmp.ge.s32.totalorder %s21_s12, 2  ;;  %p139_p2 = scmp.lt.s32.totalorder %s337_s11, 3 }
   0x5   : > { %s373_s12 = smov (%p22_p1, %s21_s12), 0  ;;  %p140_p3 = pnand %p286_p0, %p139_p2 }
   0x6   : > { %p169_p4 = scmp.lt.s32.totalorder (!%p140_p3), %s329_s9, 1  ;;  %v188_v0 = vld [vmem:[%s369_s1] sm:$0x3] (!%p140_p3) }
   0x7   : > { %143 = sbr.rel (%p140_p3) target bundleno = 21 (0x15), region = 28 }
   0xe   : > { %s375_s9 = smov (!%p169_p4, %s329_s9), 1 }
   0xf   : > { %s287_s13 = sshll.u32 %s375_s9, 1 }
  0x10   : > { %s175_s18 = scalar_lea.vmem %s368_s0, %s287_s13  ;;  %s186_s21 = scalar_lea.vmem %s370_s2, %s287_s13 }
  0x11   : > { %v187_v1 = vld [vmem:[%s175_s18] sm:$0x3] }
  0x12   : > { %v189_v2 = vadd.f32 %v188_v0, %v187_v1 }
  0x14   : > { %190 = vst [vmem:[%s186_s21] sm:$0x3] %v189_v2 }
  0x15 PF: > { %s12_s11 = sadd.s32 1, %s337_s11   ;;  %s371_s9 = smov %s333_s10 }
  0x16   : > { %p9_p5 = scmp.ge.s32.totalorder %s12_s11, 4   ;;  %s332_s10 = smov %s373_s12  }
  0x18   :  { %11 = sbr.rel (!%p9_p5) target bundleno = 2 (0x2), region = 61 }

</bundles_post_ra>
